<compile_context>
chip_gen: v7x
topology: tpu7x:2x2x1
jax: 0.10.0
libtpu: 0.0.40
codegen_flags: <defaults>
</compile_context>

<pallas_src>
import jax
import jax.numpy as jnp
from jax import lax
from jax.experimental import pallas as pl
from jax.experimental.pallas import tpu as pltpu

EPS = 1e-5


def _round_up(x, m):
    return (x + m - 1) // m * m


# ----------------------------------------------------------------------------
# Pallas kernel 1: tiled GEMM, bf16 operands, f32 accumulation
# ----------------------------------------------------------------------------
def _mm_kernel_acc(a_ref, b_ref, o_ref, acc_ref):
    k = pl.program_id(2)

    @pl.when(k == 0)
    def _():
        acc_ref[...] = jnp.zeros_like(acc_ref)

    acc_ref[...] += jnp.dot(a_ref[...], b_ref[...],
                            preferred_element_type=jnp.float32)

    @pl.when(k == pl.num_programs(2) - 1)
    def _():
        o_ref[...] = acc_ref[...].astype(o_ref.dtype)


def _mm_kernel_single(a_ref, b_ref, o_ref):
    # Single K step: write the MXU result directly, no scratch round-trip.
    o_ref[...] = jnp.dot(a_ref[...], b_ref[...],
                         preferred_element_type=jnp.float32).astype(o_ref.dtype)


def matmul_pallas(a, b):
    """a: (M, K) bf16, b: (K, Ncols) bf16  ->  (M, Ncols) f32."""
    M, K = a.shape
    _, ncols = b.shape

    # Lane-dense output: pad output channels up to a multiple of 128.
    np_ = _round_up(ncols, 128)
    tn = 256 if np_ % 256 == 0 else 128

    # Adapt the row tile to the real M (no zero-row MXU pushes for small M).
    tm = min(128, _round_up(M, 8))
    mp = _round_up(M, tm)

    # K: one block when it fits comfortably, else large 2048-wide tiles.
    max_tk = 2048
    if K <= max_tk:
        kp = K if K % 128 == 0 else _round_up(K, 128)
        tk = kp
    else:
        tk = max_tk
        kp = _round_up(K, tk)

    # Only materialize padded copies when a dimension actually needs it.
    if (mp, kp) != (M, K):
        a = jnp.zeros((mp, kp), a.dtype).at[:M, :K].set(a)
    if (kp, np_) != (K, ncols):
        b = jnp.zeros((kp, np_), b.dtype).at[:K, :ncols].set(b)

    grid = (mp // tm, np_ // tn, kp // tk)
    single_k = grid[2] == 1
    kernel = _mm_kernel_single if single_k else _mm_kernel_acc
    scratch = [] if single_k else [pltpu.VMEM((tm, tn), jnp.float32)]

    out = pl.pallas_call(
        kernel,
        out_shape=jax.ShapeDtypeStruct((mp, np_), jnp.float32),
        grid_spec=pltpu.PrefetchScalarGridSpec(
            num_scalar_prefetch=0,
            grid=grid,
            in_specs=[
                pl.BlockSpec((tm, tk), lambda i, j, k: (i, k)),
                pl.BlockSpec((tk, tn), lambda i, j, k: (k, j)),
            ],
            out_specs=pl.BlockSpec((tm, tn), lambda i, j, k: (i, j)),
            scratch_shapes=scratch,
        ),
        compiler_params=pltpu.CompilerParams(
            dimension_semantics=("parallel", "parallel", "arbitrary")),
    )(a, b)
    if (mp, np_) != (M, ncols):
        out = out[:M, :ncols]
    return out


# ----------------------------------------------------------------------------
# Pallas kernel 2: InstanceNorm3d (affine=False, biased var) + ReLU
# ----------------------------------------------------------------------------
def _inorm_relu_kernel(x_ref, o_ref):
    x = x_ref[...]                                   # (rows_tile, D*H*W)
    mean = jnp.mean(x, axis=-1, keepdims=True)
    var = jnp.mean(jnp.square(x - mean), axis=-1, keepdims=True)
    y = (x - mean) * lax.rsqrt(var + EPS)
    o_ref[...] = jnp.maximum(y, 0.0).astype(o_ref.dtype)


def instance_norm_relu(x):
    """x: (N, C, D, H, W) f32 -> same shape, per-(n,c) normalized + ReLU."""
    n, c, d, h, w = x.shape
    s = d * h * w
    rows = n * c
    flat = x.reshape(rows, s)
    # Row-tiled grid; the full spatial extent sits on lanes (lane-dense).
    # TODO(synk): per-row spatial extent must fit one VMEM block; tile the
    #             reduction for very large volumes.
    tr = 8 if rows % 8 == 0 else rows
    out = pl.pallas_call(
        _inorm_relu_kernel,
        out_shape=jax.ShapeDtypeStruct((rows, s), jnp.float32),
        grid_spec=pltpu.PrefetchScalarGridSpec(
            num_scalar_prefetch=0,
            grid=(rows // tr,),
            in_specs=[pl.BlockSpec((tr, s), lambda i: (i, 0))],
            out_specs=pl.BlockSpec((tr, s), lambda i: (i, 0)),
        ),
        compiler_params=pltpu.CompilerParams(dimension_semantics=("parallel",)),
    )(flat)
    return out.reshape(n, c, d, h, w)


# ----------------------------------------------------------------------------
# ConvTranspose3d(4, stride=2, pad=1, bias=False) via sub-pixel GEMM
# ----------------------------------------------------------------------------
def _build_subpixel_weight(w):
    """w: (Cin, Cout, 4, 4, 4) -> B: (27*Cin, 8*Cout).

    K rows indexed by (u_d, u_h, u_w, ci) over the 3x3x3 input window;
    columns indexed by (P_d, P_h, P_w, co) over the 8 output parities.
    For parity P and window position u the kernel tap is kd = 3 + P - 2u
    (zero if out of range).
    """
    cin, cout = w.shape[0], w.shape[1]
    zero = jnp.zeros((cin, cout), w.dtype)
    rows = []
    for ud in range(3):
        for uh in range(3):
            for uw in range(3):
                cols = []
                for pd in range(2):
                    for ph in range(2):
                        for pw in range(2):
                            kd = 3 + pd - 2 * ud
                            kh = 3 + ph - 2 * uh
                            kw = 3 + pw - 2 * uw
                            if 0 <= kd < 4 and 0 <= kh < 4 and 0 <= kw < 4:
                                cols.append(w[:, :, kd, kh, kw])
                            else:
                                cols.append(zero)
                rows.append(jnp.concatenate(cols, axis=1))   # (Cin, 8*Cout)
    return jnp.concatenate(rows, axis=0)                     # (27*Cin, 8*Cout)


def unet_up_forward(x, skip, w):
    """x: (N, Cin, D, H, W), skip: (N, Cs, 2D, 2H, 2W), w: (Cin, Cout, 4,4,4)."""
    n, cin, d, h, wd = x.shape
    cout = w.shape[1]

    # Channels-last + halo pad of 1 (union of the 8 shifted parity windows).
    xl = jnp.transpose(x, (0, 2, 3, 4, 1)).astype(jnp.bfloat16)
    xp = jnp.pad(xl, ((0, 0), (1, 1), (1, 1), (1, 1), (0, 0)))

    # im2col: 27 shifted slices stacked just before the channel axis.
    taps = [xp[:, ud:ud + d, uh:uh + h, uw:uw + wd, :]
            for ud in range(3) for uh in range(3) for uw in range(3)]
    a = jnp.stack(taps, axis=4).reshape(n * d * h * wd, 27 * cin)   # (M, K)

    bmat = _build_subpixel_weight(w).astype(jnp.bfloat16)           # (K, 8*Cout)

    y = matmul_pallas(a, bmat)                                      # (M, 8*Cout) f32

    # Pixel shuffle: (N, D, H, W, Pd, Ph, Pw, Cout) -> (N, Cout, 2D, 2H, 2W).
    y = y.reshape(n, d, h, wd, 2, 2, 2, cout)
    y = jnp.transpose(y, (0, 7, 1, 4, 2, 5, 3, 6))
    y = y.reshape(n, cout, 2 * d, 2 * h, 2 * wd)

    y = instance_norm_relu(y)
    return jnp.concatenate([y, skip.astype(y.dtype)], axis=1)


# ----------------------------------------------------------------------------
# Pure-JAX reference (mirrors the PyTorch module) for validation
# ----------------------------------------------------------------------------
def reference_forward(x, skip, w):
    # ConvTranspose3d(k=4, s=2, p=1) == conv of the stride-2 dilated input with
    # the spatially flipped kernel and padding k-1-p = 2.
    wf = jnp.flip(w, axis=(2, 3, 4))
    y = lax.conv_general_dilated(
        x, wf, window_strides=(1, 1, 1), padding=[(2, 2)] * 3,
        lhs_dilation=(2, 2, 2),
        dimension_numbers=("NCDHW", "IODHW", "NCDHW"),
        precision=lax.Precision.HIGHEST)
    mean = jnp.mean(y, axis=(2, 3, 4), keepdims=True)
    var = jnp.mean(jnp.square(y - mean), axis=(2, 3, 4), keepdims=True)
    y = (y - mean) * lax.rsqrt(var + EPS)
    y = jnp.maximum(y, 0.0)
    return jnp.concatenate([y, skip], axis=1)


if __name__ == "__main__":
    key = jax.random.PRNGKey(0)
    kx, ks, kw = jax.random.split(key, 3)

    N, CIN, COUT, D, H, W = 2, 32, 16, 8, 8, 8
    x = jax.random.normal(kx, (N, CIN, D, H, W), jnp.float32)
    skip = jax.random.normal(ks, (N, COUT, 2 * D, 2 * H, 2 * W), jnp.float32)
    # PyTorch ConvTranspose3d weight layout: (in_channels, out_channels, 4,4,4)
    w = jax.random.normal(kw, (CIN, COUT, 4, 4, 4), jnp.float32) / jnp.sqrt(
        float(CIN * 64))

    fwd = jax.jit(unet_up_forward)
    out = jax.block_until_ready(fwd(x, skip, w))
    assert out.shape == (N, 2 * COUT, 2 * D, 2 * H, 2 * W), out.shape

    ref = jax.block_until_ready(reference_forward(x, skip, w))
    max_err = float(jnp.max(jnp.abs(out - ref)))
    assert jnp.allclose(out, ref, atol=5e-2, rtol=5e-2), f"max abs err {max_err}"

    print("KERNEL_OK")
</pallas_src>

<mosaic_0001>
module attributes {stable_mosaic.version = 11 : i64} {
  func.func @_mm_kernel_single(%arg0: i32, %arg1: i32, %arg2: i32, %arg3: memref<128x896xbf16, #tpu.memory_space<vmem>>, %arg4: memref<896x128xbf16, #tpu.memory_space<vmem>>, %arg5: memref<128x128xf32, #tpu.memory_space<vmem>>) attributes {dimension_semantics = [#tpu.dimension_semantics<parallel>, #tpu.dimension_semantics<parallel>, #tpu.dimension_semantics<arbitrary>], iteration_bounds = array<i64: 8, 1, 1>, scalar_prefetch = 0 : i64, scratch_operands = 0 : i64, tpu.core_type = #tpu.core_type<tc>, window_params = [{transform_indices = @transform_0, window_bounds = array<i64: 128, 896>}, {transform_indices = @transform_1, window_bounds = array<i64: 896, 128>}, {transform_indices = @transform_2, window_bounds = array<i64: 128, 128>}]} {
    %c0 = arith.constant 0 : index
    %c0_0 = arith.constant 0 : index
    %0 = vector.load %arg3[%c0, %c0_0] : memref<128x896xbf16, #tpu.memory_space<vmem>>, vector<128x896xbf16>
    %c0_1 = arith.constant 0 : index
    %c0_2 = arith.constant 0 : index
    %1 = vector.load %arg4[%c0_1, %c0_2] : memref<896x128xbf16, #tpu.memory_space<vmem>>, vector<896x128xbf16>
    %cst = arith.constant dense<0.000000e+00> : vector<128x128xf32>
    %2 = tpu.matmul %0, %1, %cst {dimension_numbers = #tpu.dot_dimension_numbers<[1], [0], [0], [1], [0, 0, 1, 1], [], []>} : vector<128x896xbf16>, vector<896x128xbf16>, vector<128x128xf32> -> vector<128x128xf32>
    %c0_3 = arith.constant 0 : index
    %c0_4 = arith.constant 0 : index
    %3 = vector.load %arg5[%c0_3, %c0_4] : memref<128x128xf32, #tpu.memory_space<vmem>>, vector<128x128xf32>
    tpu.vector_store %arg5[%c0_3, %c0_4], %2 {strides = array<i32>} : memref<128x128xf32, #tpu.memory_space<vmem>>, vector<128x128xf32>,
    return
  }
  func.func @transform_0(%arg0: i32, %arg1: i32, %arg2: i32) -> (i32, i32) {
    %c0_i32 = arith.constant 0 : i32
    return %arg0, %arg2 : i32, i32
  }
  func.func @transform_1(%arg0: i32, %arg1: i32, %arg2: i32) -> (i32, i32) {
    %c0_i32 = arith.constant 0 : i32
    return %arg2, %arg1 : i32, i32
  }
  func.func @transform_2(%arg0: i32, %arg1: i32, %arg2: i32) -> (i32, i32) {
    %c0_i32 = arith.constant 0 : i32
    return %arg0, %arg1 : i32, i32
  }
}

module attributes {stable_mosaic.version = 11 : i64} {
  func.func @_inorm_relu_kernel(%arg0: i32, %arg1: memref<8x4096xf32, #tpu.memory_space<vmem>>, %arg2: memref<8x4096xf32, #tpu.memory_space<vmem>>) attributes {dimension_semantics = [#tpu.dimension_semantics<parallel>], iteration_bounds = array<i64: 4>, scalar_prefetch = 0 : i64, scratch_operands = 0 : i64, tpu.core_type = #tpu.core_type<tc>, window_params = [{transform_indices = @transform_0, window_bounds = array<i64: 8, 4096>}, {transform_indices = @transform_1, window_bounds = array<i64: 8, 4096>}]} {
    %c0 = arith.constant 0 : index
    %c0_0 = arith.constant 0 : index
    %0 = vector.load %arg1[%c0, %c0_0] : memref<8x4096xf32, #tpu.memory_space<vmem>>, vector<8x4096xf32>
    %cst = arith.constant dense<0.000000e+00> : vector<8xf32>
    %1 = vector.multi_reduction <add>, %0, %cst [1] : vector<8x4096xf32> to vector<8xf32>
    %2 = vector.shape_cast %1 : vector<8xf32> to vector<8x1xf32>
    %cst_1 = arith.constant 4.096000e+03 : f32
    %3 = vector.broadcast %cst_1 : f32 to vector<8x1xf32>
    %4 = arith.divf %2, %3 : vector<8x1xf32>
    %5 = vector.broadcast %4 : vector<8x1xf32> to vector<8x4096xf32>
    %6 = arith.subf %0, %5 : vector<8x4096xf32>
    %7 = arith.mulf %6, %6 : vector<8x4096xf32>
    %cst_2 = arith.constant dense<0.000000e+00> : vector<8xf32>
    %8 = vector.multi_reduction <add>, %7, %cst_2 [1] : vector<8x4096xf32> to vector<8xf32>
    %9 = vector.shape_cast %8 : vector<8xf32> to vector<8x1xf32>
    %cst_3 = arith.constant 4.096000e+03 : f32
    %10 = vector.broadcast %cst_3 : f32 to vector<8x1xf32>
    %11 = arith.divf %9, %10 : vector<8x1xf32>
    %12 = vector.broadcast %4 : vector<8x1xf32> to vector<8x4096xf32>
    %13 = arith.subf %0, %12 : vector<8x4096xf32>
    %cst_4 = arith.constant 9.99999974E-6 : f32
    %14 = vector.broadcast %cst_4 : f32 to vector<8x1xf32>
    %15 = arith.addf %11, %14 : vector<8x1xf32>
    %16 = math.rsqrt %15 : vector<8x1xf32>
    %17 = vector.broadcast %16 : vector<8x1xf32> to vector<8x4096xf32>
    %18 = arith.mulf %13, %17 : vector<8x4096xf32>
    %cst_5 = arith.constant 0.000000e+00 : f32
    %19 = vector.broadcast %cst_5 : f32 to vector<8x4096xf32>
    %20 = arith.maximumf %18, %19 : vector<8x4096xf32>
    %c0_6 = arith.constant 0 : index
    %c0_7 = arith.constant 0 : index
    %21 = vector.load %arg2[%c0_6, %c0_7] : memref<8x4096xf32, #tpu.memory_space<vmem>>, vector<8x4096xf32>
    tpu.vector_store %arg2[%c0_6, %c0_7], %20 {strides = array<i32>} : memref<8x4096xf32, #tpu.memory_space<vmem>>, vector<8x4096xf32>,
    return
  }
  func.func @transform_0(%arg0: i32) -> (i32, i32) {
    %c0_i32 = arith.constant 0 : i32
    %c0_i32_0 = arith.constant 0 : i32
    return %arg0, %c0_i32 : i32, i32
  }
  func.func @transform_1(%arg0: i32) -> (i32, i32) {
    %c0_i32 = arith.constant 0 : i32
    %c0_i32_0 = arith.constant 0 : i32
    return %arg0, %c0_i32 : i32, i32
  }
}

</mosaic_0001>

<bundles_post_ra>
// kernel: unet_up_forward.2
= control target key start
LH: loop header
LB: loop body
LE: loop exit
PB: predicated region body
PF: predicated region fallthrough
CT: control target
= control target key end

     0   :  { %s2097_s9 = smov 0   ;;  %s2099_s10 = smov 0   ;;  %s2429_s0 = inlined_call_operand.vmem [shape: bf16[1024,896], index: 0, kind: input, shape index: {}]   ;;  %s2430_s1 = inlined_call_operand.vmem [shape: bf16[896,128], index: 1, kind: input, shape index: {}]   ;;  %s2431_s2 = inlined_call_operand.vmem [shape: f32[1024,128], index: 2, kind: output, shape index: {}]  }
   0x1   :  { %s2101_s11 = smov 0  }
   0x2 LB: > { %s31_s12 = sadd.s32 1, %s2076_s10  ;;  %p1538_p0 = scmp.ge.s32.totalorder %s2080_s11, 1  ;;  %s2080_s11 = sphi %s2101_s11, %s12_s11   ;;  %s2076_s10 = sphi %s2099_s10, %s2433_s10   ;;  %s2072_s9 = sphi %s2097_s9, %s2432_s9  }
   0x3   : > { %p33_p1 = scmp.ge.s32.totalorder %s31_s12, 8  ;;  %p158_p2 = scmp.lt.s32.totalorder %s2080_s11, 9 }
   0x5   : > { %s2435_s12 = smov (%p33_p1, %s31_s12), 0  ;;  %p159_p3 = pnand %p1538_p0, %p158_p2 }
   0x6   : > { %v1922_v0 = vld [vmem:[%s2430_s1 + $0x40] sm:$0xff] (!%p159_p3)   ;;  %v1926_v4 = vld [vmem:[%s2430_s1 + $0x48] sm:$0xff] (!%p159_p3)   ;;  %v1930_v8 = vld [vmem:[%s2430_s1 + $0x50] sm:$0xff] (!%p159_p3)   ;;  %s1539_s19 = sshll.u32 (!%p159_p3), %s2072_s9, 4 }
   0x7   : > { %162 = sbr.rel (%p159_p3) target bundleno = 382 (0x17e), region = 28  ;;  %v1923_v1 = vld [vmem:[%s2430_s1 + $0xc0] sm:$0xff] (!%p159_p3)   ;;  %1657 = vmatprep.subr.bf16.mxu0 (!%p159_p3), %v1922_v0  ;;  %v1927_v5 = vld [vmem:[%s2430_s1 + $0xc8] sm:$0xff] (!%p159_p3)   ;;  %v1931_v9 = vld [vmem:[%s2430_s1 + $0xd0] sm:$0xff] (!%p159_p3)   ;;  %p198_p4 = scmp.lt.s32.totalorder (!%p159_p3), %s1539_s19, 127 }
   0x8   : > { %v1924_v2 = vld [vmem:[%s2430_s1] sm:$0xff] (!%p159_p3)   ;;  %1721 = vmatprep.subr.bf16.mxu1 (!%p159_p3), %v1923_v1  ;;  %v1928_v6 = vld [vmem:[%s2430_s1 + $0x8] sm:$0xff] (!%p159_p3)   ;;  %v1932_v10 = vld [vmem:[%s2430_s1 + $0x10] sm:$0xff] (!%p159_p3)  }
   0x9   : > { %v1925_v3 = vld [vmem:[%s2430_s1 + $0x80] sm:$0xff] (!%p159_p3)   ;;  %1658 = vmatpush3.bf16.msra.mxu0 (!%p159_p3), %v1924_v2  ;;  %v1929_v7 = vld [vmem:[%s2430_s1 + $0x88] sm:$0xff] (!%p159_p3)   ;;  %v1933_v11 = vld [vmem:[%s2430_s1 + $0x90] sm:$0xff] (!%p159_p3)  }
   0xa   : > { %1722 = vmatpush3.bf16.msra.mxu1 (!%p159_p3), %v1925_v3  ;;  %1659 = vmatprep.subr.bf16.mxu0 (!%p159_p3), %v1926_v4  ;;  %v1934_v12 = vld [vmem:[%s2430_s1 + $0x58] sm:$0xff] (!%p159_p3)   ;;  %v1938_v16 = vld [vmem:[%s2430_s1 + $0x60] sm:$0xff] (!%p159_p3)   ;;  %v1942_v20 = vld [vmem:[%s2430_s1 + $0x68] sm:$0xff] (!%p159_p3)  }
   0xb   : > { %1723 = vmatprep.subr.bf16.mxu1 (!%p159_p3), %v1927_v5  ;;  %v1935_v13 = vld [vmem:[%s2430_s1 + $0xd8] sm:$0xff] (!%p159_p3)   ;;  %v1939_v17 = vld [vmem:[%s2430_s1 + $0xe0] sm:$0xff] (!%p159_p3)   ;;  %v1943_v21 = vld [vmem:[%s2430_s1 + $0xe8] sm:$0xff] (!%p159_p3)  }
   0xc   : > { %v1936_v14 = vld [vmem:[%s2430_s1 + $0x18] sm:$0xff] (!%p159_p3)   ;;  %v1940_v18 = vld [vmem:[%s2430_s1 + $0x20] sm:$0xff] (!%p159_p3)   ;;  %v1944_v22 = vld [vmem:[%s2430_s1 + $0x28] sm:$0xff] (!%p159_p3)  }
   0xd   : > { %1660 = vmatpush3.bf16.msra.mxu0 (!%p159_p3), %v1928_v6  ;;  %v1937_v15 = vld [vmem:[%s2430_s1 + $0x98] sm:$0xff] (!%p159_p3)   ;;  %v1941_v19 = vld [vmem:[%s2430_s1 + $0xa0] sm:$0xff] (!%p159_p3)   ;;  %v1945_v23 = vld [vmem:[%s2430_s1 + $0xa8] sm:$0xff] (!%p159_p3)  }
   0xe   : > { %1724 = vmatpush3.bf16.msra.mxu1 %v1929_v7  ;;  %1661 = vmatprep.subr.bf16.mxu0 %v1930_v8  ;;  %s2437_s19 = smov (!%p198_p4, %s1539_s19), 127  ;;  %v1946_v24 = vld [vmem:[%s2430_s1 + $0x70] sm:$0xff]   ;;  %v1950_v28 = vld [vmem:[%s2430_s1 + $0x78] sm:$0xff]   ;;  %v1960_v36 = vld [vmem:[%s2430_s1 + $0x140] sm:$0xff]  }
   0xf   : > { %1725 = vmatprep.subr.bf16.mxu1 %v1931_v9  ;;  %v1947_v25 = vld [vmem:[%s2430_s1 + $0xf0] sm:$0xff]   ;;  %s1897_s17 = smul.u32 28, %s2437_s19  ;;  %v1951_v29 = vld [vmem:[%s2430_s1 + $0xf8] sm:$0xff]   ;;  %v1961_v37 = vld [vmem:[%s2430_s1 + $0x100] sm:$0xff]  }
  0x10   : > { %v1948_v26 = vld [vmem:[%s2430_s1 + $0x30] sm:$0xff]   ;;  %v1952_v30 = vld [vmem:[%s2430_s1 + $0x38] sm:$0xff]   ;;  %v1968_v42 = vld [vmem:[%s2430_s1 + $0x148] sm:$0xff]  }
  0x11   : > { %1662 = vmatpush3.bf16.msra.mxu0 %v1932_v10  ;;  %v1949_v27 = vld [vmem:[%s2430_s1 + $0xb0] sm:$0xff]   ;;  %s2214_s28 = scalar_lea.vmem %s2429_s0, %s1897_s17  ;;  %v1953_v31 = vld [vmem:[%s2430_s1 + $0xb8] sm:$0xff]   ;;  %v1969_v43 = vld [vmem:[%s2430_s1 + $0x108] sm:$0xff]  }
  0x12   : > { %1726 = vmatpush3.bf16.msra.mxu1 %v1933_v11  ;;  %1663 = vmatprep.subr.bf16.mxu0 %v1934_v12  ;;  %v1954_v32 = vld [vmem:[%s2214_s28] ss:$28 sps:$4 sm:$0xff]   ;;  %v1957_v34 = vld [vmem:[%s2214_s28 + $0x8] ss:$28 sps:$4 sm:$0xff]   ;;  %v1966_v40 = vld [vmem:[%s2214_s28 + $0x38] ss:$28 sps:$4 sm:$0xff]  }
  0x13   : > { %1727 = vmatprep.subr.bf16.mxu1 %v1935_v13  ;;  %v1956_v33 = vld [vmem:[%s2214_s28 + $0x4] ss:$28 sps:$4 sm:$0xff]   ;;  %v1959_v35 = vld [vmem:[%s2214_s28 + $0xc] ss:$28 sps:$4 sm:$0xff]   ;;  %v1962_v38 = vld [vmem:[%s2214_s28 + $0x3c] ss:$28 sps:$4 sm:$0xff]  }
  0x14   : > { %1059 = vmatprep.mubr.bf16.mxu0 %v1956_v33  ;;  %1156 = vmatprep.mubr.bf16.mxu1 %v1959_v35  ;;  %v1964_v39 = vld [vmem:[%s2214_s28 + $0x44] ss:$28 sps:$4 sm:$0xff]   ;;  %v1970_v44 = vld [vmem:[%s2214_s28 + $0x74] ss:$28 sps:$4 sm:$0xff]   ;;  %v1972_v45 = vld [vmem:[%s2214_s28 + $0x7c] ss:$28 sps:$4 sm:$0xff]  }
  0x15   : > { %1664 = vmatpush3.bf16.msra.mxu0 %v1936_v14  ;;  %v1967_v41 = vld [vmem:[%s2214_s28 + $0x40] ss:$28 sps:$4 sm:$0xff]   ;;  %v1976_v46 = vld [vmem:[%s2430_s1 + $0x150] sm:$0xff]   ;;  %v1978_v50 = vld [vmem:[%s2214_s28 + $0xac] ss:$28 sps:$4 sm:$0xff]  }
  0x16   : > { %1728 = vmatpush3.bf16.msra.mxu1 %v1937_v15  ;;  %1665 = vmatprep.subr.bf16.mxu0 %v1938_v16  ;;  %v1977_v47 = vld [vmem:[%s2430_s1 + $0x110] sm:$0xff]   ;;  %v1984_v52 = vld [vmem:[%s2430_s1 + $0x158] sm:$0xff]   ;;  %v1982_v54 = vld [vmem:[%s2214_s28 + $0xa8] ss:$28 sps:$4 sm:$0xff]  }
  0x17   : > { %1729 = vmatprep.subr.bf16.mxu1 %v1939_v17  ;;  %v1974_v48 = vld [vmem:[%s2214_s28 + $0x70] ss:$28 sps:$4 sm:$0xff]   ;;  %v1975_v49 = vld [vmem:[%s2214_s28 + $0x78] ss:$28 sps:$4 sm:$0xff]   ;;  %v1992_v55 = vld [vmem:[%s2430_s1 + $0x160] sm:$0xff]  }
  0x18   : > { %v1980_v51 = vld [vmem:[%s2214_s28 + $0xb4] ss:$28 sps:$4 sm:$0xff]   ;;  %v1985_v53 = vld [vmem:[%s2430_s1 + $0x118] sm:$0xff]   ;;  %v1993_v57 = vld [vmem:[%s2430_s1 + $0x120] sm:$0xff]  }
  0x19   : > { %1666 = vmatpush3.bf16.msra.mxu0 %v1940_v18  ;;  %v1983_v56 = vld [vmem:[%s2214_s28 + $0xb0] ss:$28 sps:$4 sm:$0xff]   ;;  %v1994_v58 = vld [vmem:[%s2430_s1 + $0x180] sm:$0xff]   ;;  %v1995_v3 = vld [vmem:[%s2214_s28 + $0x11c] ss:$28 sps:$4 sm:$0xff]  }
  0x1a   : > { %1730 = vmatpush3.bf16.msra.mxu1 %v1941_v19  ;;  %1667 = vmatprep.subr.bf16.mxu0 %v1942_v20  ;;  %v1986_v59 = vld [vmem:[%s2214_s28 + $0xe4] ss:$28 sps:$4 sm:$0xff]   ;;  %v1988_v60 = vld [vmem:[%s2214_s28 + $0xec] ss:$28 sps:$4 sm:$0xff]   ;;  %v2004_v0 = vld [vmem:[%s2430_s1 + $0x190] sm:$0xff]  }
  0x1b   : > { %1731 = vmatprep.subr.bf16.mxu1 %v1943_v21  ;;  %v2001_v61 = vld [vmem:[%s2430_s1 + $0x168] sm:$0xff]   ;;  %v1990_v1 = vld [vmem:[%s2214_s28 + $0xe0] ss:$28 sps:$4 sm:$0xff]   ;;  %v2011_v5 = vld [vmem:[%s2430_s1 + $0x170] sm:$0xff]  }
  0x1c   : > { %v2002_v62 = vld [vmem:[%s2430_s1 + $0x188] sm:$0xff]   ;;  %v1997_v4 = vld [vmem:[%s2214_s28 + $0x124] ss:$28 sps:$4 sm:$0xff]   ;;  %v2012_v6 = vld [vmem:[%s2430_s1 + $0x198] sm:$0xff]  }
  0x1d   : > { %1668 = vmatpush3.bf16.msra.mxu0 %v1944_v22  ;;  %v2003_v63 = vld [vmem:[%s2430_s1 + $0x128] sm:$0xff]   ;;  %v2013_v7 = vld [vmem:[%s2430_s1 + $0x130] sm:$0xff]   ;;  %v2014_v8 = vld [vmem:[%s2430_s1 + $0x1a0] sm:$0xff]  }
  0x1e   : > { %1732 = vmatpush3.bf16.msra.mxu1 %v1945_v23  ;;  %1669 = vmatprep.subr.bf16.mxu0 %v1946_v24  ;;  %v1991_v2 = vld [vmem:[%s2214_s28 + $0xe8] ss:$28 sps:$4 sm:$0xff]   ;;  %v1999_v9 = vld [vmem:[%s2214_s28 + $0x118] ss:$28 sps:$4 sm:$0xff]   ;;  %v2000_v10 = vld [vmem:[%s2214_s28 + $0x120] ss:$28 sps:$4 sm:$0xff]  }
  0x1f   : > { %1733 = vmatprep.subr.bf16.mxu1 %v1947_v25  ;;  %v2005_v11 = vld [vmem:[%s2214_s28 + $0x154] ss:$28 sps:$4 sm:$0xff]   ;;  %v2007_v12 = vld [vmem:[%s2214_s28 + $0x15c] ss:$28 sps:$4 sm:$0xff]   ;;  %v2022_v14 = vld [vmem:[%s2430_s1 + $0x1a8] sm:$0xff]  }
  0x20   : > { %v2021_v13 = vld [vmem:[%s2430_s1 + $0x178] sm:$0xff]   ;;  %v2024_v16 = vld [vmem:[%s2430_s1 + $0x1b0] sm:$0xff]   ;;  %v2015_v19 = vld [vmem:[%s2214_s28 + $0x18c] ss:$28 sps:$4 sm:$0xff]  }
  0x21   : > { %1670 = vmatpush3.bf16.msra.mxu0 %v1948_v26  ;;  %v2023_v15 = vld [vmem:[%s2430_s1 + $0x138] sm:$0xff]   ;;  %v2009_v17 = vld [vmem:[%s2214_s28 + $0x150] ss:$28 sps:$4 sm:$0xff]   ;;  %v2019_v22 = vld [vmem:[%s2214_s28 + $0x188] ss:$28 sps:$4 sm:$0xff]  }
  0x22   : > { %1734 = vmatpush3.bf16.msra.mxu1 %v1949_v27  ;;  %1671 = vmatprep.subr.bf16.mxu0 %v1950_v28  ;;  %v2010_v18 = vld [vmem:[%s2214_s28 + $0x158] ss:$28 sps:$4 sm:$0xff]   ;;  %v2020_v23 = vld [vmem:[%s2214_s28 + $0x190] ss:$28 sps:$4 sm:$0xff]  }
  0x23   : > { %1735 = vmatprep.subr.bf16.mxu1 %v1951_v29  ;;  %v2017_v20 = vld [vmem:[%s2214_s28 + $0x194] ss:$28 sps:$4 sm:$0xff]   ;;  %v2028_v21 = vld [vmem:[%s2430_s1 + $0x1b8] sm:$0xff]   ;;  %v2031_v28 = vld [vmem:[%s2214_s28 + $0x4c] ss:$28 sps:$4 sm:$0xff]  }
  0x24   : > { %v2027_v24 = vld [vmem:[%s2214_s28 + $0x14] ss:$28 sps:$4 sm:$0xff]   ;;  %v2037_v29 = vld [vmem:[%s2214_s28 + $0x88] ss:$28 sps:$4 sm:$0xff]   ;;  %v2039_v35 = vld [vmem:[%s2214_s28 + $0xbc] ss:$28 sps:$4 sm:$0xff]  }
  0x25   : > { %1672 = vmatpush3.bf16.msra.mxu0 %v1952_v30  ;;  %v2029_v25 = vld [vmem:[%s2214_s28 + $0x18] ss:$28 sps:$4 sm:$0xff]   ;;  %v2025_v26 = vld [vmem:[%s2214_s28 + $0x10] ss:$28 sps:$4 sm:$0xff]   ;;  %v2033_v30 = vld [vmem:[%s2214_s28 + $0x48] ss:$28 sps:$4 sm:$0xff]  }
  0x26   : > { %1736 = vmatpush3.bf16.msra.mxu1 %v1953_v31  ;;  %1785 = vmatprep.subr.bf16.mxu0 %v1960_v36  ;;  %v2030_v27 = vld [vmem:[%s2214_s28 + $0x50] ss:$28 sps:$4 sm:$0xff]   ;;  %v2034_v31 = vld [vmem:[%s2214_s28 + $0x84] ss:$28 sps:$4 sm:$0xff]   ;;  %v2045_v33 = vld [vmem:[%s2214_s28 + $0xf8] ss:$28 sps:$4 sm:$0xff]  }
  0x27   : > { %1865 = vmatprep.subr.bf16.mxu1 %v1994_v58  ;;  %v2046_v36 = vld [vmem:[%s2214_s28 + $0x130] ss:$28 sps:$4 sm:$0xff]  }
  0x28   : > { %1060 = vmatmul.mubr.bf16.vlgmr.msra.gmra.mrb[0].mxu0 %v1954_v32  ;;  %v2038_v32 = vld [vmem:[%s2214_s28 + $0xc0] ss:$28 sps:$4 sm:$0xff]  }
  0x29   : > { %1157 = vmatmul.mubr.bf16.vlgmr.msra.gmra.mrb[0].mxu1 %v1957_v34  ;;  %1786 = vmatpush3.bf16.msra.mxu0 %v1961_v37  ;;  %v2036_v34 = vld [vmem:[%s2214_s28 + $0x80] ss:$28 sps:$4 sm:$0xff]   ;;  %v2053_v37 = vld [vmem:[%s2214_s28 + $0x168] ss:$28 sps:$4 sm:$0xff]  }
  0x2a   : > { %1067 = vmatprep.mubr.bf16.mxu0 %v1962_v38  ;;  %1164 = vmatprep.mubr.bf16.mxu1 %v1964_v39  ;;  %v2041_v38 = vld [vmem:[%s2214_s28 + $0xb8] ss:$28 sps:$4 sm:$0xff]  }
  0x2b   : > { %1787 = vmatprep.subr.bf16.mxu0 %v1968_v42  ;;  %1866 = vmatpush3.bf16.msra.mxu1 %v1994_v58  ;;  %v2042_v39 = vld [vmem:[%s2214_s28 + $0xf4] ss:$28 sps:$4 sm:$0xff]   ;;  %v2047_v42 = vld [vmem:[%s2214_s28 + $0x12c] ss:$28 sps:$4 sm:$0xff]  }
  0x2c   : > { %1867 = vmatprep.subr.bf16.mxu1 %v2002_v62 }
  0x2d   : > { %1788 = vmatpush3.bf16.msra.mxu0 %v1969_v43  ;;  %v2049_v43 = vld [vmem:[%s2214_s28 + $0x128] ss:$28 sps:$4 sm:$0xff]  }
  0x2e   : > { %1789 = vmatprep.subr.bf16.mxu0 %v1976_v46  ;;  %v2055_v46 = vld [vmem:[%s2214_s28 + $0x19c] ss:$28 sps:$4 sm:$0xff]  }
  0x2f   : > { %1868 = vmatpush3.bf16.msra.mxu1 %v2002_v62 }
  0x30   : > { %1068 = vmatmul.mubr.bf16.gmra.mrb[4].mxu0 %v1966_v40  ;;  %1869 = vmatprep.subr.bf16.mxu1 %v2004_v0  ;;  %v2054_v40 = vld [vmem:[%s2214_s28 + $0x1a0] ss:$28 sps:$4 sm:$0xff]  }
  0x31   : > { %1165 = vmatmul.mubr.bf16.gmra.mrb[4].mxu1 %v1967_v41  ;;  %1075 = vmatprep.mubr.bf16.mxu0 %v1970_v44  ;;  %v2044_v41 = vld [vmem:[%s2214_s28 + $0xf0] ss:$28 sps:$4 sm:$0xff]   ;;  %v2050_v44 = vld [vmem:[%s2214_s28 + $0x164] ss:$28 sps:$4 sm:$0xff]  }
  0x32   : > { %1172 = vmatprep.mubr.bf16.mxu1 %v1972_v45  ;;  %1790 = vmatpush3.bf16.msra.mxu0 %v1977_v47  ;;  %v2052_v45 = vld [vmem:[%s2214_s28 + $0x160] ss:$28 sps:$4 sm:$0xff]   ;;  %v2057_v47 = vld [vmem:[%s2214_s28 + $0x198] ss:$28 sps:$4 sm:$0xff]   ;;  %s1542_s28 = sshll.u32 %s2437_s19, 3 }
  0x33   : > { %1791 = vmatprep.subr.bf16.mxu0 %v1984_v52  ;;  %1870 = vmatpush3.bf16.msra.mxu1 %v2004_v0  ;;  %s2387_s13 = scalar_lea.vmem %s2431_s2, %s1542_s28 }
  0x34   : > { %1871 = vmatprep.subr.bf16.mxu1 %v2012_v6 }
  0x36   : > { %1792 = vmatpush3.bf16.msra.mxu0 %v1985_v53 }
  0x37   : > { %1793 = vmatprep.subr.bf16.mxu0 %v1992_v55  ;;  %1872 = vmatpush3.bf16.msra.mxu1 %v2012_v6 }
  0x38   : > { %1076 = vmatmul.mubr.bf16.gmra.mrb[8].mxu0 %v1974_v48  ;;  %1873 = vmatprep.subr.bf16.mxu1 %v2014_v8 }
  0x39   : > { %1173 = vmatmul.mubr.bf16.gmra.mrb[8].mxu1 %v1975_v49  ;;  %1083 = vmatprep.mubr.bf16.mxu0 %v1978_v50 }
  0x3a   : > { %1180 = vmatprep.mubr.bf16.mxu1 %v1980_v51  ;;  %1794 = vmatpush3.bf16.msra.mxu0 %v1993_v57 }
  0x3b   : > { %1795 = vmatprep.subr.bf16.mxu0 %v2001_v61  ;;  %1874 = vmatpush3.bf16.msra.mxu1 %v2014_v8 }
  0x3c   : > { %1875 = vmatprep.subr.bf16.mxu1 %v2022_v14 }
  0x3e   : > { %1796 = vmatpush3.bf16.msra.mxu0 %v2003_v63 }
  0x3f   : > { %1797 = vmatprep.subr.bf16.mxu0 %v2011_v5  ;;  %1876 = vmatpush3.bf16.msra.mxu1 %v2022_v14 }
  0x40   : > { %1084 = vmatmul.mubr.bf16.gmra.mrb[12].mxu0 %v1982_v54  ;;  %1877 = vmatprep.subr.bf16.mxu1 %v2024_v16 }
  0x41   : > { %1181 = vmatmul.mubr.bf16.gmra.mrb[12].mxu1 %v1983_v56  ;;  %1091 = vmatprep.mubr.bf16.mxu0 %v1986_v59 }
  0x42   : > { %1188 = vmatprep.mubr.bf16.mxu1 %v1988_v60  ;;  %1798 = vmatpush3.bf16.msra.mxu0 %v2013_v7 }
  0x43   : > { %1799 = vmatprep.subr.bf16.mxu0 %v2021_v13  ;;  %1878 = vmatpush3.bf16.msra.mxu1 %v2024_v16 }
  0x44   : > { %1879 = vmatprep.subr.bf16.mxu1 %v2028_v21 }
  0x46   : > { %1800 = vmatpush3.bf16.msra.mxu0 %v2023_v15 }
  0x47   : > { %1880 = vmatpush3.bf16.msra.mxu1 %v2028_v21 }
  0x48   : > { %1092 = vmatmul.mubr.bf16.gmra.mrb[16].mxu0 %v1990_v1 }
  0x49   : > { %1189 = vmatmul.mubr.bf16.gmra.mrb[16].mxu1 %v1991_v2  ;;  %1099 = vmatprep.mubr.bf16.mxu0 %v1995_v3 }
  0x4a   : > { %1196 = vmatprep.mubr.bf16.mxu1 %v1997_v4 }
  0x50   : > { %1100 = vmatmul.mubr.bf16.gmra.mrb[20].mxu0 %v1999_v9 }
  0x51   : > { %1197 = vmatmul.mubr.bf16.gmra.mrb[20].mxu1 %v2000_v10  ;;  %1107 = vmatprep.mubr.bf16.mxu0 %v2005_v11 }
  0x52   : > { %1204 = vmatprep.mubr.bf16.mxu1 %v2007_v12 }
  0x58   : > { %1108 = vmatmul.mubr.bf16.gmra.mrb[24].mxu0 %v2009_v17 }
  0x59   : > { %1205 = vmatmul.mubr.bf16.gmra.mrb[24].mxu1 %v2010_v18  ;;  %1115 = vmatprep.mubr.bf16.mxu0 %v2015_v19 }
  0x5a   : > { %1212 = vmatprep.mubr.bf16.mxu1 %v2017_v20 }
  0x60   : > { %1116 = vmatmul.mubr.bf16.gmra.mrb[28].mxu0 %v2019_v22 }
  0x61   : > { %1213 = vmatmul.mubr.bf16.gmra.mrb[28].mxu1 %v2020_v23  ;;  %1253 = vmatprep.mubr.bf16.mxu0 %v2027_v24 }
  0x62   : > { %1881 = vmatprep.mubr.bf16.mxu1 %v2029_v25 }
  0x68   : > { %1254 = vmatmul.mubr.bf16.vlgmr.msra.gmra.mrb[32].mxu0 %v2025_v26 }
  0x69   : > { %1882 = vmatmul.mubr.bf16.vlgmr.msra.gmra.mrb[32].mxu1 %v2030_v27  ;;  %1261 = vmatprep.mubr.bf16.mxu0 %v2031_v28 }
  0x6a   : > { %1885 = vmatprep.mubr.bf16.mxu1 %v2037_v29 }
  0x70   : > { %1262 = vmatmul.mubr.bf16.gmra.mrb[36].mxu0 %v2033_v30 }
  0x71   : > { %1269 = vmatprep.mubr.bf16.mxu0 %v2034_v31  ;;  %1886 = vmatmul.mubr.bf16.gmra.mrb[36].mxu1 %v2038_v32 }
  0x72   : > { %1889 = vmatprep.mubr.bf16.mxu1 %v2045_v33 }
  0x78   : > { %1270 = vmatmul.mubr.bf16.gmra.mrb[40].mxu0 %v2036_v34 }
  0x79   : > { %1277 = vmatprep.mubr.bf16.mxu0 %v2039_v35  ;;  %1890 = vmatmul.mubr.bf16.gmra.mrb[40].mxu1 %v2046_v36 }
  0x7a   : > { %1893 = vmatprep.mubr.bf16.mxu1 %v2053_v37 }
  0x80   : > { %1278 = vmatmul.mubr.bf16.gmra.mrb[44].mxu0 %v2041_v38 }
  0x81   : > { %1285 = vmatprep.mubr.bf16.mxu0 %v2042_v39  ;;  %1894 = vmatmul.mubr.bf16.gmra.mrb[44].mxu1 %v2054_v40 }
  0x88   : > { %1286 = vmatmul.mubr.bf16.gmra.mrb[48].mxu0 %v2044_v41 }
  0x89   : > { %1293 = vmatprep.mubr.bf16.mxu0 %v2047_v42 }
  0x90   : > { %1294 = vmatmul.mubr.bf16.gmra.mrb[52].mxu0 %v2049_v43 }
  0x91   : > { %1301 = vmatprep.mubr.bf16.mxu0 %v2050_v44 }
  0x98   : > { %1302 = vmatmul.mubr.bf16.gmra.mrb[56].mxu0 %v2052_v45 }
  0x99   : > { %1309 = vmatprep.mubr.bf16.mxu0 %v2055_v46 }
  0xa0   : > { %1310 = vmatmul.mubr.bf16.gmra.mrb[60].mxu0 %v2057_v47 }
  0xfb   : > { %v1673_v48 = vpop.f32.mrb[0].mxu0 }
  0xfc   : > { %v1737_v49 = vpop.f32.mrb[0].mxu1  ;;  %v1674_v50 = vpop.f32.mrb[1].mxu0 }
  0xfd   : > { %v1675_v51 = vadd.f32 %v1674_v50, %v1673_v48  ;;  %v1738_v52 = vpop.f32.mrb[1].mxu1  ;;  %v1676_v53 = vpop.f32.mrb[2].mxu0 }
  0xfe   : > { %v1739_v54 = vadd.f32 %v1738_v52, %v1737_v49  ;;  %v1740_v55 = vpop.f32.mrb[2].mxu1  ;;  %v1677_v56 = vpop.f32.mrb[3].mxu0 }
  0xff   : > { %v1678_v57 = vadd.f32 %v1677_v56, %v1676_v53  ;;  %v1741_v58 = vpop.f32.mrb[3].mxu1 }
 0x100   : > { %v2350_v59 = vadd.f32 %v1739_v54, %v1675_v51  ;;  %v1742_v60 = vadd.f32 %v1741_v58, %v1740_v55 }
 0x102   : > { %v2352_v61 = vadd.f32 %v1742_v60, %v1678_v57 }
 0x103   : > { %v1679_v62 = vpop.f32.mrb[4].mxu0 }
 0x104   : > { %v1743_v63 = vpop.f32.mrb[4].mxu1  ;;  %v1680_v0 = vpop.f32.mrb[5].mxu0 }
 0x105   : > { %v1681_v1 = vadd.f32 %v1680_v0, %v1679_v62  ;;  %v1744_v2 = vpop.f32.mrb[5].mxu1  ;;  %v1682_v3 = vpop.f32.mrb[6].mxu0 }
 0x106   : > { %v1745_v4 = vadd.f32 %v1744_v2, %v1743_v63  ;;  %v1746_v5 = vpop.f32.mrb[6].mxu1  ;;  %v1683_v6 = vpop.f32.mrb[7].mxu0 }
 0x107   : > { %v1684_v7 = vadd.f32 %v1683_v6, %v1682_v3  ;;  %v1747_v8 = vpop.f32.mrb[7].mxu1 }
 0x108   : > { %v2354_v9 = vadd.f32 %v1745_v4, %v1681_v1  ;;  %v1748_v10 = vadd.f32 %v1747_v8, %v1746_v5 }
 0x10a   : > { %v2356_v11 = vadd.f32 %v1748_v10, %v1684_v7 }
 0x10b   : > { %v1685_v12 = vpop.f32.mrb[8].mxu0 }
 0x10c   : > { %v1749_v13 = vpop.f32.mrb[8].mxu1  ;;  %v1686_v14 = vpop.f32.mrb[9].mxu0 }
 0x10d   : > { %v1687_v15 = vadd.f32 %v1686_v14, %v1685_v12  ;;  %v1750_v16 = vpop.f32.mrb[9].mxu1  ;;  %v1688_v17 = vpop.f32.mrb[10].mxu0 }
 0x10e   : > { %v1751_v18 = vadd.f32 %v1750_v16, %v1749_v13  ;;  %v1752_v19 = vpop.f32.mrb[10].mxu1  ;;  %v1689_v20 = vpop.f32.mrb[11].mxu0 }
 0x10f   : > { %v1690_v21 = vadd.f32 %v1689_v20, %v1688_v17  ;;  %v1753_v22 = vpop.f32.mrb[11].mxu1 }
 0x110   : > { %v2358_v23 = vadd.f32 %v1751_v18, %v1687_v15  ;;  %v1754_v24 = vadd.f32 %v1753_v22, %v1752_v19 }
 0x112   : > { %v2360_v25 = vadd.f32 %v1754_v24, %v1690_v21 }
 0x113   : > { %v1691_v26 = vpop.f32.mrb[12].mxu0 }
 0x114   : > { %v1755_v27 = vpop.f32.mrb[12].mxu1  ;;  %v1692_v28 = vpop.f32.mrb[13].mxu0 }
 0x115   : > { %v1693_v29 = vadd.f32 %v1692_v28, %v1691_v26  ;;  %v1756_v30 = vpop.f32.mrb[13].mxu1  ;;  %v1694_v31 = vpop.f32.mrb[14].mxu0 }
 0x116   : > { %v1757_v32 = vadd.f32 %v1756_v30, %v1755_v27  ;;  %v1758_v33 = vpop.f32.mrb[14].mxu1  ;;  %v1695_v34 = vpop.f32.mrb[15].mxu0 }
 0x117   : > { %v1696_v35 = vadd.f32 %v1695_v34, %v1694_v31  ;;  %v1759_v36 = vpop.f32.mrb[15].mxu1 }
 0x118   : > { %v2362_v37 = vadd.f32 %v1757_v32, %v1693_v29  ;;  %v1760_v38 = vadd.f32 %v1759_v36, %v1758_v33 }
 0x11a   : > { %v2364_v39 = vadd.f32 %v1760_v38, %v1696_v35 }
 0x11b   : > { %v1697_v40 = vpop.f32.mrb[16].mxu0 }
 0x11c   : > { %v1761_v41 = vpop.f32.mrb[16].mxu1  ;;  %v1698_v42 = vpop.f32.mrb[17].mxu0 }
 0x11d   : > { %v1699_v43 = vadd.f32 %v1698_v42, %v1697_v40  ;;  %v1762_v44 = vpop.f32.mrb[17].mxu1  ;;  %v1700_v45 = vpop.f32.mrb[18].mxu0 }
 0x11e   : > { %v1763_v46 = vadd.f32 %v1762_v44, %v1761_v41  ;;  %v1764_v47 = vpop.f32.mrb[18].mxu1  ;;  %v1701_v48 = vpop.f32.mrb[19].mxu0 }
 0x11f   : > { %v1702_v49 = vadd.f32 %v1701_v48, %v1700_v45  ;;  %v1765_v50 = vpop.f32.mrb[19].mxu1 }
 0x120   : > { %v2366_v51 = vadd.f32 %v1763_v46, %v1699_v43  ;;  %v1766_v52 = vadd.f32 %v1765_v50, %v1764_v47 }
 0x122   : > { %v2368_v53 = vadd.f32 %v1766_v52, %v1702_v49 }
 0x123   : > { %v1703_v54 = vpop.f32.mrb[20].mxu0 }
 0x124   : > { %v1767_v55 = vpop.f32.mrb[20].mxu1  ;;  %v1704_v56 = vpop.f32.mrb[21].mxu0 }
 0x125   : > { %v1705_v57 = vadd.f32 %v1704_v56, %v1703_v54  ;;  %v1768_v58 = vpop.f32.mrb[21].mxu1  ;;  %v1706_v60 = vpop.f32.mrb[22].mxu0 }
 0x126   : > { %v1769_v62 = vadd.f32 %v1768_v58, %v1767_v55  ;;  %v1770_v63 = vpop.f32.mrb[22].mxu1  ;;  %v1707_v0 = vpop.f32.mrb[23].mxu0 }
 0x127   : > { %v1708_v1 = vadd.f32 %v1707_v0, %v1706_v60  ;;  %v1771_v2 = vpop.f32.mrb[23].mxu1 }
 0x128   : > { %v2370_v3 = vadd.f32 %v1769_v62, %v1705_v57  ;;  %v1772_v4 = vadd.f32 %v1771_v2, %v1770_v63 }
 0x12a   : > { %v2372_v5 = vadd.f32 %v1772_v4, %v1708_v1 }
 0x12b   : > { %v1709_v6 = vpop.f32.mrb[24].mxu0 }
 0x12c   : > { %v1773_v7 = vpop.f32.mrb[24].mxu1  ;;  %v1710_v8 = vpop.f32.mrb[25].mxu0 }
 0x12d   : > { %v1711_v10 = vadd.f32 %v1710_v8, %v1709_v6  ;;  %v1774_v12 = vpop.f32.mrb[25].mxu1  ;;  %v1712_v13 = vpop.f32.mrb[26].mxu0 }
 0x12e   : > { %v1775_v14 = vadd.f32 %v1774_v12, %v1773_v7  ;;  %v1776_v15 = vpop.f32.mrb[26].mxu1  ;;  %v1713_v16 = vpop.f32.mrb[27].mxu0 }
 0x12f   : > { %v1714_v17 = vadd.f32 %v1713_v16, %v1712_v13  ;;  %v1777_v18 = vpop.f32.mrb[27].mxu1 }
 0x130   : > { %v2374_v19 = vadd.f32 %v1775_v14, %v1711_v10  ;;  %v1778_v20 = vadd.f32 %v1777_v18, %v1776_v15 }
 0x132   : > { %v2376_v21 = vadd.f32 %v1778_v20, %v1714_v17 }
 0x133   : > { %v1715_v22 = vpop.f32.mrb[28].mxu0 }
 0x134   : > { %v1779_v24 = vpop.f32.mrb[28].mxu1  ;;  %v1716_v26 = vpop.f32.mrb[29].mxu0 }
 0x135   : > { %v1717_v27 = vadd.f32 %v1716_v26, %v1715_v22  ;;  %v1780_v28 = vpop.f32.mrb[29].mxu1  ;;  %v1718_v29 = vpop.f32.mrb[30].mxu0 }
 0x136   : > { %v1781_v30 = vadd.f32 %v1780_v28, %v1779_v24  ;;  %v1782_v31 = vpop.f32.mrb[30].mxu1  ;;  %v1719_v32 = vpop.f32.mrb[31].mxu0 }
 0x137   : > { %v1720_v33 = vadd.f32 %v1719_v32, %v1718_v29  ;;  %v1783_v34 = vpop.f32.mrb[31].mxu1 }
 0x138   : > { %v2378_v35 = vadd.f32 %v1781_v30, %v1717_v27  ;;  %v1784_v36 = vadd.f32 %v1783_v34, %v1782_v31 }
 0x13a   : > { %v2380_v38 = vadd.f32 %v1784_v36, %v1720_v33 }
 0x13b   : > { %v1801_v40 = vpop.f32.mrb[32].mxu0 }
 0x13c   : > { %v1802_v41 = vpop.f32.mrb[33].mxu0  ;;  %v1883_v42 = vpop.f32.mrb[32].mxu1 }
 0x13d   : > { %v1803_v43 = vadd.f32 %v1802_v41, %v1801_v40  ;;  %v1804_v44 = vpop.f32.mrb[34].mxu0  ;;  %v1352_v45 = vpop.f32.mrb[33].mxu1 }
 0x13e   : > { %v1805_v46 = vpop.f32.mrb[35].mxu0  ;;  %v1884_v47 = vpop.f32.mrb[34].mxu1 }
 0x13f   : > { %v1806_v48 = vadd.f32 %v1805_v46, %v1804_v44  ;;  %v1256_v49 = vadd.f32 %v1803_v43, %v2350_v59  ;;  %v1355_v50 = vpop.f32.mrb[35].mxu1 }
 0x141   : > { %v1353_v52 = vadd.f32 %v1352_v45, %v1256_v49  ;;  %v1259_v54 = vadd.f32 %v1806_v48, %v2352_v61 }
 0x143   : > { %1415 = vst [vmem:[%s2387_s13] sm:$0xff] %v1353_v52  ;;  %v1356_v55 = vadd.f32 %v1355_v50, %v1259_v54  ;;  %v1807_v56 = vpop.f32.mrb[36].mxu0 }
 0x144   : > { %v1808_v57 = vpop.f32.mrb[37].mxu0  ;;  %v1887_v58 = vpop.f32.mrb[36].mxu1 }
 0x145   : > { %1416 = vst [vmem:[%s2387_s13 + $0x8] sm:$0xff] %v1356_v55  ;;  %v1809_v59 = vadd.f32 %v1808_v57, %v1807_v56  ;;  %v1810_v60 = vpop.f32.mrb[38].mxu0  ;;  %v1368_v62 = vpop.f32.mrb[37].mxu1 }
 0x146   : > { %v1811_v63 = vpop.f32.mrb[39].mxu0  ;;  %v1888_v0 = vpop.f32.mrb[38].mxu1 }
 0x147   : > { %v1264_v1 = vadd.f32 %v1809_v59, %v2354_v9  ;;  %v1812_v2 = vadd.f32 %v1811_v63, %v1810_v60  ;;  %v1371_v4 = vpop.f32.mrb[39].mxu1 }
 0x149   : > { %v1361_v6 = vadd.f32 %v1883_v42, %v1264_v1  ;;  %v1267_v61 = vadd.f32 %v1812_v2, %v2356_v11 }
 0x14b   : > { %1417 = vst [vmem:[%s2387_s13 + $0x10] sm:$0xff] %v1361_v6  ;;  %v1364_v7 = vadd.f32 %v1884_v47, %v1267_v61  ;;  %v1813_v8 = vpop.f32.mrb[40].mxu0 }
 0x14c   : > { %v1814_v10 = vpop.f32.mrb[41].mxu0  ;;  %v1891_v12 = vpop.f32.mrb[40].mxu1 }
 0x14d   : > { %1418 = vst [vmem:[%s2387_s13 + $0x18] sm:$0xff] %v1364_v7  ;;  %v1815_v13 = vadd.f32 %v1814_v10, %v1813_v8  ;;  %v1816_v14 = vpop.f32.mrb[42].mxu0  ;;  %v1384_v15 = vpop.f32.mrb[41].mxu1 }
 0x14e   : > { %v1817_v16 = vpop.f32.mrb[43].mxu0  ;;  %v1892_v17 = vpop.f32.mrb[42].mxu1 }
 0x14f   : > { %v1818_v18 = vadd.f32 %v1817_v16, %v1816_v14  ;;  %v1272_v9 = vadd.f32 %v1815_v13, %v2358_v23  ;;  %v1387_v20 = vpop.f32.mrb[43].mxu1 }
 0x151   : > { %v1369_v22 = vadd.f32 %v1368_v62, %v1272_v9  ;;  %v1275_v11 = vadd.f32 %v1818_v18, %v2360_v25 }
 0x153   : > { %1419 = vst [vmem:[%s2387_s13 + $0x20] sm:$0xff] %v1369_v22  ;;  %v1372_v24 = vadd.f32 %v1371_v4, %v1275_v11  ;;  %v1819_v26 = vpop.f32.mrb[44].mxu0 }
 0x154   : > { %v1820_v27 = vpop.f32.mrb[45].mxu0  ;;  %v1895_v28 = vpop.f32.mrb[44].mxu1 }
 0x155   : > { %1420 = vst [vmem:[%s2387_s13 + $0x28] sm:$0xff] %v1372_v24  ;;  %v1821_v29 = vadd.f32 %v1820_v27, %v1819_v26  ;;  %v1822_v30 = vpop.f32.mrb[46].mxu0  ;;  %v1400_v31 = vpop.f32.mrb[45].mxu1 }
 0x156   : > { %v1823_v32 = vpop.f32.mrb[47].mxu0  ;;  %v1896_v33 = vpop.f32.mrb[46].mxu1 }
 0x157   : > { %v1280_v34 = vadd.f32 %v1821_v29, %v2362_v37  ;;  %v1824_v23 = vadd.f32 %v1823_v32, %v1822_v30  ;;  %v1403_v36 = vpop.f32.mrb[47].mxu1 }
 0x159   : > { %v1377_v40 = vadd.f32 %v1887_v58, %v1280_v34  ;;  %v1283_v25 = vadd.f32 %v1824_v23, %v2364_v39 }
 0x15b   : > { %1421 = vst [vmem:[%s2387_s13 + $0x30] sm:$0xff] %v1377_v40  ;;  %v1380_v41 = vadd.f32 %v1888_v0, %v1283_v25  ;;  %v1825_v42 = vpop.f32.mrb[48].mxu0 }
 0x15c   : > { %v1826_v43 = vpop.f32.mrb[49].mxu0 }
 0x15d   : > { %1422 = vst [vmem:[%s2387_s13 + $0x38] sm:$0xff] %v1380_v41  ;;  %v1827_v44 = vadd.f32 %v1826_v43, %v1825_v42  ;;  %v1828_v45 = vpop.f32.mrb[50].mxu0 }
 0x15e   : > { %v1829_v46 = vpop.f32.mrb[51].mxu0 }
 0x15f   : > { %v1830_v47 = vadd.f32 %v1829_v46, %v1828_v45  ;;  %v1288_v48 = vadd.f32 %v1827_v44, %v2366_v51 }
 0x161   : > { %v1385_v37 = vadd.f32 %v1384_v15, %v1288_v48  ;;  %v1291_v49 = vadd.f32 %v1830_v47, %v2368_v53 }
 0x163   : > { %1423 = vst [vmem:[%s2387_s13 + $0x40] sm:$0xff] %v1385_v37  ;;  %v1388_v50 = vadd.f32 %v1387_v20, %v1291_v49  ;;  %v1831_v39 = vpop.f32.mrb[52].mxu0 }
 0x164   : > { %v1832_v52 = vpop.f32.mrb[53].mxu0 }
 0x165   : > { %1424 = vst [vmem:[%s2387_s13 + $0x48] sm:$0xff] %v1388_v50  ;;  %v1833_v54 = vadd.f32 %v1832_v52, %v1831_v39  ;;  %v1834_v55 = vpop.f32.mrb[54].mxu0 }
 0x166   : > { %v1835_v56 = vpop.f32.mrb[55].mxu0 }
 0x167   : > { %v1296_v57 = vadd.f32 %v1833_v54, %v2370_v3  ;;  %v1836_v58 = vadd.f32 %v1835_v56, %v1834_v55 }
 0x169   : > { %v1393_v59 = vadd.f32 %v1891_v12, %v1296_v57  ;;  %v1299_v60 = vadd.f32 %v1836_v58, %v2372_v5 }
 0x16b   : > { %1425 = vst [vmem:[%s2387_s13 + $0x50] sm:$0xff] %v1393_v59  ;;  %v1396_v51 = vadd.f32 %v1892_v17, %v1299_v60  ;;  %v1837_v53 = vpop.f32.mrb[56].mxu0 }
 0x16c   : > { %v1838_v62 = vpop.f32.mrb[57].mxu0 }
 0x16d   : > { %1426 = vst [vmem:[%s2387_s13 + $0x58] sm:$0xff] %v1396_v51  ;;  %v1839_v63 = vadd.f32 %v1838_v62, %v1837_v53  ;;  %v1840_v0 = vpop.f32.mrb[58].mxu0 }
 0x16e   : > { %v1841_v1 = vpop.f32.mrb[59].mxu0 }
 0x16f   : > { %v1842_v2 = vadd.f32 %v1841_v1, %v1840_v0  ;;  %v1304_v4 = vadd.f32 %v1839_v63, %v2374_v19 }
 0x171   : > { %v1401_v6 = vadd.f32 %v1400_v31, %v1304_v4  ;;  %v1307_v3 = vadd.f32 %v1842_v2, %v2376_v21 }
 0x173   : > { %1427 = vst [vmem:[%s2387_s13 + $0x60] sm:$0xff] %v1401_v6  ;;  %v1404_v61 = vadd.f32 %v1403_v36, %v1307_v3  ;;  %v1843_v5 = vpop.f32.mrb[60].mxu0 }
 0x174   : > { %v1844_v7 = vpop.f32.mrb[61].mxu0 }
 0x175   : > { %1428 = vst [vmem:[%s2387_s13 + $0x68] sm:$0xff] %v1404_v61  ;;  %v1845_v8 = vadd.f32 %v1844_v7, %v1843_v5  ;;  %v1846_v10 = vpop.f32.mrb[62].mxu0 }
 0x176   : > { %v1847_v12 = vpop.f32.mrb[63].mxu0 }
 0x177   : > { %v1312_v13 = vadd.f32 %v1845_v8, %v2378_v35  ;;  %v1848_v14 = vadd.f32 %v1847_v12, %v1846_v10 }
 0x179   : > { %v1409_v15 = vadd.f32 %v1895_v28, %v1312_v13  ;;  %v1315_v16 = vadd.f32 %v1848_v14, %v2380_v38 }
 0x17b   : > { %1429 = vst [vmem:[%s2387_s13 + $0x70] sm:$0xff] %v1409_v15  ;;  %v1412_v19 = vadd.f32 %v1896_v33, %v1315_v16 }
 0x17d   : > { %1430 = vst [vmem:[%s2387_s13 + $0x78] sm:$0xff] %v1412_v19 }
 0x17e PF: > { %s12_s11 = sadd.s32 1, %s2080_s11   ;;  %s2432_s9 = smov %s2076_s10 }
 0x17f   : > { %p9_p5 = scmp.ge.s32.totalorder %s12_s11, 10   ;;  %s2433_s10 = smov %s2435_s12 }
 0x181   :  { %11 = sbr.rel (!%p9_p5) target bundleno = 2 (0x2), region = 61 }

// kernel: unet_up_forward.3
= control target key start
LH: loop header
LB: loop body
LE: loop exit
PB: predicated region body
PF: predicated region fallthrough
CT: control target
= control target key end

     0   :  { %s476_s6 = smov 0   ;;  %s881_s0 = inlined_call_operand.vmem [shape: f32[32,4096], index: 0, kind: input, shape index: {}]   ;;  %s882_s1 = inlined_call_operand.vmem [shape: f32[32,4096], index: 1, kind: output, shape index: {}]  }
   0x1 LB: > { %s435_s7 = sadd.s32 4294967295, %s464_s6   ;;  %p439_p0 = scmp.ge.s32.totalorder %s464_s6, 1  ;;  %s464_s6 = sphi %s476_s6, %s11_s6  }
   0x2   : > { %p87_p1 = scmp.lt.s32.totalorder %s464_s6, 5 }
   0x4   : > { %p88_p2 = pnand %p439_p0, %p87_p1 }
   0x5   : > { %p107_p3 = scmp.lt.s32.totalorder (!%p88_p2), %s435_s7, 3 }
   0x6   : > { %91 = sbr.rel (%p88_p2) target bundleno = 472 (0x1d8), region = 24 }
   0xd   : > { %s884_s7 = smov (!%p107_p3, %s435_s7), 3 }
   0xe   : > { %s446_s8 = sshll.u32 %s884_s7, 8 }
   0xf   : > { %s492_s11 = scalar_lea.vmem %s881_s0, %s446_s8  ;;  %s824_s14 = scalar_lea.vmem %s882_s1, %s446_s8 }
  0x10   : > { %v495_v0 = vld [vmem:[%s492_s11] sm:$0xff]  ;;  %v498_v1 = vld [vmem:[%s492_s11 + $0x8] sm:$0xff]  ;;  %v501_v2 = vld [vmem:[%s492_s11 + $0x10] sm:$0xff] }
  0x11   : > { %v149_v3 = vadd.f32 %v498_v1, %v495_v0  ;;  %v506_v4 = vld [vmem:[%s492_s11 + $0x18] sm:$0xff]  ;;  %v510_v6 = vld [vmem:[%s492_s11 + $0x20] sm:$0xff]  ;;  %v514_v8 = vld [vmem:[%s492_s11 + $0x28] sm:$0xff] }
  0x12   : > { %v518_v10 = vld [vmem:[%s492_s11 + $0x30] sm:$0xff]  ;;  %v522_v12 = vld [vmem:[%s492_s11 + $0x38] sm:$0xff]  ;;  %v526_v14 = vld [vmem:[%s492_s11 + $0x40] sm:$0xff] }
  0x13   : > { %v150_v5 = vadd.f32 %v149_v3, %v501_v2  ;;  %v530_v16 = vld [vmem:[%s492_s11 + $0x48] sm:$0xff]  ;;  %v534_v18 = vld [vmem:[%s492_s11 + $0x50] sm:$0xff]  ;;  %v538_v20 = vld [vmem:[%s492_s11 + $0x58] sm:$0xff] }
  0x14   : > { %v542_v22 = vld [vmem:[%s492_s11 + $0x60] sm:$0xff]  ;;  %v546_v24 = vld [vmem:[%s492_s11 + $0x68] sm:$0xff]  ;;  %v550_v26 = vld [vmem:[%s492_s11 + $0x70] sm:$0xff] }
  0x15   : > { %v151_v7 = vadd.f32 %v150_v5, %v506_v4  ;;  %v554_v28 = vld [vmem:[%s492_s11 + $0x78] sm:$0xff]  ;;  %v558_v30 = vld [vmem:[%s492_s11 + $0x80] sm:$0xff]  ;;  %v562_v32 = vld [vmem:[%s492_s11 + $0x88] sm:$0xff] }
  0x16   : > { %v566_v34 = vld [vmem:[%s492_s11 + $0x90] sm:$0xff]  ;;  %v570_v36 = vld [vmem:[%s492_s11 + $0x98] sm:$0xff]  ;;  %v574_v38 = vld [vmem:[%s492_s11 + $0xa0] sm:$0xff] }
  0x17   : > { %v152_v9 = vadd.f32 %v151_v7, %v510_v6  ;;  %v578_v40 = vld [vmem:[%s492_s11 + $0xa8] sm:$0xff]  ;;  %v582_v42 = vld [vmem:[%s492_s11 + $0xb0] sm:$0xff]  ;;  %v586_v44 = vld [vmem:[%s492_s11 + $0xb8] sm:$0xff] }
  0x18   : > { %v590_v46 = vld [vmem:[%s492_s11 + $0xc0] sm:$0xff]  ;;  %v594_v48 = vld [vmem:[%s492_s11 + $0xc8] sm:$0xff]  ;;  %v598_v50 = vld [vmem:[%s492_s11 + $0xd0] sm:$0xff] }
  0x19   : > { %v153_v11 = vadd.f32 %v152_v9, %v514_v8  ;;  %v602_v52 = vld [vmem:[%s492_s11 + $0xd8] sm:$0xff]  ;;  %v606_v54 = vld [vmem:[%s492_s11 + $0xe0] sm:$0xff]  ;;  %v610_v56 = vld [vmem:[%s492_s11 + $0xe8] sm:$0xff] }
  0x1a   : > { %v614_v58 = vld [vmem:[%s492_s11 + $0xf0] sm:$0xff]  ;;  %v618_v60 = vld [vmem:[%s492_s11 + $0xf8] sm:$0xff] }
  0x1b   : > { %v154_v13 = vadd.f32 %v153_v11, %v518_v10 }
  0x1d   : > { %v155_v15 = vadd.f32 %v154_v13, %v522_v12 }
  0x1f   : > { %v156_v17 = vadd.f32 %v155_v15, %v526_v14 }
  0x21   : > { %v157_v19 = vadd.f32 %v156_v17, %v530_v16 }
  0x23   : > { %v158_v21 = vadd.f32 %v157_v19, %v534_v18 }
  0x25   : > { %v159_v23 = vadd.f32 %v158_v21, %v538_v20 }
  0x27   : > { %v160_v25 = vadd.f32 %v159_v23, %v542_v22 }
  0x29   : > { %v161_v27 = vadd.f32 %v160_v25, %v546_v24 }
  0x2b   : > { %v162_v29 = vadd.f32 %v161_v27, %v550_v26 }
  0x2d   : > { %v163_v31 = vadd.f32 %v162_v29, %v554_v28 }
  0x2f   : > { %v164_v33 = vadd.f32 %v163_v31, %v558_v30 }
  0x31   : > { %v165_v35 = vadd.f32 %v164_v33, %v562_v32 }
  0x33   : > { %v166_v37 = vadd.f32 %v165_v35, %v566_v34 }
  0x35   : > { %v167_v39 = vadd.f32 %v166_v37, %v570_v36 }
  0x37   : > { %v168_v41 = vadd.f32 %v167_v39, %v574_v38 }
  0x39   : > { %v169_v43 = vadd.f32 %v168_v41, %v578_v40 }
  0x3b   : > { %v170_v45 = vadd.f32 %v169_v43, %v582_v42 }
  0x3d   : > { %v171_v47 = vadd.f32 %v170_v45, %v586_v44 }
  0x3f   : > { %v172_v49 = vadd.f32 %v171_v47, %v590_v46 }
  0x41   : > { %v173_v51 = vadd.f32 %v172_v49, %v594_v48 }
  0x43   : > { %v174_v53 = vadd.f32 %v173_v51, %v598_v50 }
  0x45   : > { %v175_v55 = vadd.f32 %v174_v53, %v602_v52 }
  0x47   : > { %v176_v57 = vadd.f32 %v175_v55, %v606_v54 }
  0x49   : > { %v177_v59 = vadd.f32 %v176_v57, %v610_v56 }
  0x4b   : > { %v178_v61 = vadd.f32 %v177_v59, %v614_v58 }
  0x4d   : > { %v179_v62 = vadd.f32 %v178_v61, %v618_v60 }
  0x4f   : > { %180 = vadd.xlane.f32.xlu0 %v179_v62 }
  0xdc   : > { %v181_v63 = vpop.xlane.xlu0 %180 }
  0xdd   : > { %v622_v3 = vmul.f32 0.00024414063, %v181_v63 }
  0xdf   : > { %v626_v5 = vsub.f32 %v495_v0, %v622_v3  ;;  %v630_v7 = vsub.f32 %v498_v1, %v622_v3  ;;  %v634_v9 = vsub.f32 %v501_v2, %v622_v3  ;;  %v642_v15 = vsub.f32 %v506_v4, %v622_v3 }
  0xe0   : > { %v646_v0 = vsub.f32 %v510_v6, %v622_v3  ;;  %v652_v2 = vsub.f32 %v514_v8, %v622_v3  ;;  %v658_v4 = vsub.f32 %v518_v10, %v622_v3  ;;  %v664_v25 = vsub.f32 %v522_v12, %v622_v3 }
  0xe1   : > { %v216_v11 = vmul.f32 %v626_v5, %v626_v5  ;;  %v217_v13 = vmul.f32 %v630_v7, %v630_v7  ;;  %v218_v1 = vmul.f32 %v634_v9, %v634_v9  ;;  %v219_v19 = vmul.f32 %v642_v15, %v642_v15 }
  0xe2   : > { %v220_v6 = vmul.f32 %v646_v0, %v646_v0  ;;  %v221_v8 = vmul.f32 %v652_v2, %v652_v2  ;;  %v670_v29 = vsub.f32 %v526_v14, %v622_v3  ;;  %v222_v10 = vmul.f32 %v658_v4, %v658_v4 }
  0xe3   : > { %v248_v17 = vadd.f32 %v217_v13, %v216_v11  ;;  %v676_v33 = vsub.f32 %v530_v16, %v622_v3  ;;  %v223_v12 = vmul.f32 %v664_v25, %v664_v25  ;;  %v682_v37 = vsub.f32 %v534_v18, %v622_v3 }
  0xe4   : > { %v224_v14 = vmul.f32 %v670_v29, %v670_v29  ;;  %v688_v41 = vsub.f32 %v538_v20, %v622_v3  ;;  %v694_v45 = vsub.f32 %v542_v22, %v622_v3  ;;  %v700_v49 = vsub.f32 %v546_v24, %v622_v3 }
  0xe5   : > { %v249_v21 = vadd.f32 %v248_v17, %v218_v1  ;;  %v225_v16 = vmul.f32 %v676_v33, %v676_v33  ;;  %v226_v18 = vmul.f32 %v682_v37, %v682_v37  ;;  %v706_v53 = vsub.f32 %v550_v26, %v622_v3 }
  0xe6   : > { %v227_v20 = vmul.f32 %v688_v41, %v688_v41  ;;  %v228_v22 = vmul.f32 %v694_v45, %v694_v45  ;;  %v712_v57 = vsub.f32 %v554_v28, %v622_v3  ;;  %v229_v24 = vmul.f32 %v700_v49, %v700_v49 }
  0xe7   : > { %v250_v23 = vadd.f32 %v249_v21, %v219_v19  ;;  %v718_v61 = vsub.f32 %v558_v30, %v622_v3  ;;  %v230_v26 = vmul.f32 %v706_v53, %v706_v53  ;;  %v724_v63 = vsub.f32 %v562_v32, %v622_v3 }
  0xe8   : > { %v231_v28 = vmul.f32 %v712_v57, %v712_v57  ;;  %v730_v13 = vsub.f32 %v566_v34, %v622_v3  ;;  %v736_v17 = vsub.f32 %v570_v36, %v622_v3  ;;  %v742_v21 = vsub.f32 %v574_v38, %v622_v3 }
  0xe9   : > { %v251_v27 = vadd.f32 %v250_v23, %v220_v6  ;;  %v232_v30 = vmul.f32 %v718_v61, %v718_v61  ;;  %v233_v32 = vmul.f32 %v724_v63, %v724_v63  ;;  %v748_v23 = vsub.f32 %v578_v40, %v622_v3 }
  0xea   : > { %v234_v34 = vmul.f32 %v730_v13, %v730_v13  ;;  %v235_v36 = vmul.f32 %v736_v17, %v736_v17  ;;  %v236_v38 = vmul.f32 %v742_v21, %v742_v21 }
  0xeb   : > { %v252_v31 = vadd.f32 %v251_v27, %v221_v8  ;;  %v754_v27 = vsub.f32 %v582_v42, %v622_v3  ;;  %v209_v42 = vsub.f32 %v594_v48, %v622_v3  ;;  %v213_v48 = vsub.f32 %v610_v56, %v622_v3 }
  0xed   : > { %v253_v35 = vadd.f32 %v252_v31, %v222_v10  ;;  %v207_v31 = vsub.f32 %v586_v44, %v622_v3 }
  0xef   : > { %v254_v39 = vadd.f32 %v253_v35, %v223_v12  ;;  %v237_v12 = vmul.f32 %v748_v23, %v748_v23  ;;  %v208_v35 = vsub.f32 %v590_v46, %v622_v3  ;;  %v212_v46 = vsub.f32 %v606_v54, %v622_v3 }
  0xf1   : > { %v255_v43 = vadd.f32 %v254_v39, %v224_v14  ;;  %v238_v14 = vmul.f32 %v754_v27, %v754_v27  ;;  %v240_v44 = vmul.f32 %v208_v35, %v208_v35 }
  0xf3   : > { %v256_v47 = vadd.f32 %v255_v43, %v225_v16  ;;  %v239_v16 = vmul.f32 %v207_v31, %v207_v31 }
  0xf5   : > { %v257_v51 = vadd.f32 %v256_v47, %v226_v18  ;;  %v210_v18 = vsub.f32 %v598_v50, %v622_v3  ;;  %v214_v50 = vsub.f32 %v614_v58, %v622_v3 }
  0xf7   : > { %v258_v55 = vadd.f32 %v257_v51, %v227_v20  ;;  %v211_v20 = vsub.f32 %v602_v52, %v622_v3  ;;  %v241_v51 = vmul.f32 %v209_v42, %v209_v42  ;;  %v215_v52 = vsub.f32 %v618_v60, %v622_v3 }
  0xf9   : > { %v259_v59 = vadd.f32 %v258_v55, %v228_v22  ;;  %v242_v55 = vmul.f32 %v210_v18, %v210_v18  ;;  %v247_v54 = vmul.f32 %v215_v52, %v215_v52 }
  0xfb   : > { %v260_v62 = vadd.f32 %v259_v59, %v229_v24  ;;  %v243_v59 = vmul.f32 %v211_v20, %v211_v20 }
  0xfd   : > { %v261_v11 = vadd.f32 %v260_v62, %v230_v26  ;;  %v244_v62 = vmul.f32 %v212_v46, %v212_v46 }
  0xff   : > { %v262_v1 = vadd.f32 %v261_v11, %v231_v28  ;;  %v245_v11 = vmul.f32 %v213_v48, %v213_v48 }
 0x101   : > { %v263_v19 = vadd.f32 %v262_v1, %v232_v30  ;;  %v246_v1 = vmul.f32 %v214_v50, %v214_v50 }
 0x103   : > { %v264_v6 = vadd.f32 %v263_v19, %v233_v32 }
 0x105   : > { %v265_v8 = vadd.f32 %v264_v6, %v234_v34 }
 0x107   : > { %v266_v10 = vadd.f32 %v265_v8, %v235_v36 }
 0x109   : > { %v267_v40 = vadd.f32 %v266_v10, %v236_v38 }
 0x10b   : > { %v268_v39 = vadd.f32 %v267_v40, %v237_v12 }
 0x10d   : > { %v269_v43 = vadd.f32 %v268_v39, %v238_v14 }
 0x10f   : > { %v270_v47 = vadd.f32 %v269_v43, %v239_v16 }
 0x111   : > { %v271_v22 = vadd.f32 %v270_v47, %v240_v44 }
 0x113   : > { %v272_v24 = vadd.f32 %v271_v22, %v241_v51 }
 0x115   : > { %v273_v26 = vadd.f32 %v272_v24, %v242_v55 }
 0x117   : > { %v274_v28 = vadd.f32 %v273_v26, %v243_v59 }
 0x119   : > { %v275_v30 = vadd.f32 %v274_v28, %v244_v62 }
 0x11b   : > { %v276_v32 = vadd.f32 %v275_v30, %v245_v11 }
 0x11d   : > { %v277_v19 = vadd.f32 %v276_v32, %v246_v1 }
 0x11f   : > { %v278_v34 = vadd.f32 %v277_v19, %v247_v54 }
 0x121   : > { %279 = vadd.xlane.f32.xlu0 %v278_v34 }
 0x1ae   : > { %v280_v6 = vpop.xlane.xlu0 %279 }
 0x1af   : > { %v281_v56 = vmul.f32 0.00024414063, %v280_v6 }
 0x1b1   : > { %v282_v36 = vadd.f32 1e-05, %v281_v56 }
 0x1b3   : > { %456 = vrsqrt.f32 %v282_v36 }
 0x1bd   : > { %v457_v8 = vpop.eup %456 }
 0x1be   : > { %v284_v58 = vmul.f32 %v457_v8, %v626_v5  ;;  %v285_v38 = vmul.f32 %v457_v8, %v630_v7  ;;  %v286_v10 = vmul.f32 %v457_v8, %v634_v9  ;;  %v287_v60 = vmul.f32 %v457_v8, %v642_v15 }
 0x1bf   : > { %v288_v3 = vmul.f32 %v457_v8, %v646_v0  ;;  %v289_v12 = vmul.f32 %v457_v8, %v652_v2  ;;  %v290_v40 = vmul.f32 %v457_v8, %v658_v4  ;;  %v291_v14 = vmul.f32 %v457_v8, %v664_v25 }
 0x1c0   : > { %v292_v39 = vmul.f32 %v457_v8, %v670_v29  ;;  %v293_v16 = vmul.f32 %v457_v8, %v676_v33  ;;  %v294_v5 = vmul.f32 %v457_v8, %v682_v37  ;;  %v295_v7 = vmul.f32 %v457_v8, %v688_v41 }
 0x1c1   : > { %v296_v9 = vmul.f32 %v457_v8, %v694_v45  ;;  %v297_v15 = vmul.f32 %v457_v8, %v700_v49  ;;  %v298_v0 = vmul.f32 %v457_v8, %v706_v53  ;;  %v299_v2 = vmul.f32 %v457_v8, %v712_v57 }
 0x1c2   : > { %v300_v4 = vmul.f32 %v457_v8, %v718_v61  ;;  %v301_v25 = vmul.f32 %v457_v8, %v724_v63  ;;  %v302_v29 = vmul.f32 %v457_v8, %v730_v13  ;;  %v303_v33 = vmul.f32 %v457_v8, %v736_v17 }
 0x1c3   : > { %v801_v37 = vmul.f32 %v457_v8, %v742_v21  ;;  %v804_v41 = vmul.f32 %v457_v8, %v748_v23  ;;  %v807_v45 = vmul.f32 %v457_v8, %v754_v27  ;;  %v809_v49 = vmul.f32 %v457_v8, %v207_v31 }
 0x1c4   : > { %v811_v53 = vmul.f32 %v457_v8, %v208_v35  ;;  %v813_v57 = vmul.f32 %v457_v8, %v209_v42  ;;  %v815_v61 = vmul.f32 %v457_v8, %v210_v18  ;;  %v817_v63 = vmul.f32 %v457_v8, %v211_v20 }
 0x1c5   : > { %v826_v13 = vmul.f32 %v457_v8, %v212_v46  ;;  %v828_v17 = vmul.f32 %v457_v8, %v213_v48  ;;  %v830_v21 = vmul.f32 %v457_v8, %v214_v50  ;;  %v832_v23 = vmul.f32 %v457_v8, %v215_v52 }
 0x1c6   : > { %v316_v27 = vmax.f32 %v284_v58, 0.0  ;;  %v317_v31 = vmax.f32 %v285_v38, 0.0  ;;  %v318_v35 = vmax.f32 %v286_v10, 0.0  ;;  %v319_v42 = vmax.f32 %v287_v60, 0.0 }
 0x1c7   : > { %v320_v43 = vmax.f32 %v288_v3, 0.0  ;;  %v321_v18 = vmax.f32 %v289_v12, 0.0  ;;  %v322_v44 = vmax.f32 %v290_v40, 0.0  ;;  %v323_v47 = vmax.f32 %v291_v14, 0.0 }
 0x1c8   : > { %v324_v20 = vmax.f32 %v292_v39, 0.0  ;;  %v325_v51 = vmax.f32 %v293_v16, 0.0  ;;  %v326_v22 = vmax.f32 %v294_v5, 0.0  ;;  %v327_v46 = vmax.f32 %v295_v7, 0.0  ;;  %348 = vst [vmem:[%s824_s14] sm:$0xff] %v316_v27  ;;  %349 = vst [vmem:[%s824_s14 + $0x8] sm:$0xff] %v317_v31 }
 0x1c9   : > { %350 = vst [vmem:[%s824_s14 + $0x10] sm:$0xff] %v318_v35  ;;  %351 = vst [vmem:[%s824_s14 + $0x18] sm:$0xff] %v319_v42  ;;  %v328_v55 = vmax.f32 %v296_v9, 0.0  ;;  %v329_v24 = vmax.f32 %v297_v15, 0.0  ;;  %v330_v48 = vmax.f32 %v298_v0, 0.0  ;;  %v331_v59 = vmax.f32 %v299_v2, 0.0 }
 0x1ca   : > { %352 = vst [vmem:[%s824_s14 + $0x20] sm:$0xff] %v320_v43  ;;  %353 = vst [vmem:[%s824_s14 + $0x28] sm:$0xff] %v321_v18  ;;  %v332_v26 = vmax.f32 %v300_v4, 0.0  ;;  %v333_v50 = vmax.f32 %v301_v25, 0.0  ;;  %v334_v62 = vmax.f32 %v302_v29, 0.0  ;;  %v335_v28 = vmax.f32 %v303_v33, 0.0 }
 0x1cb   : > { %354 = vst [vmem:[%s824_s14 + $0x30] sm:$0xff] %v322_v44  ;;  %355 = vst [vmem:[%s824_s14 + $0x38] sm:$0xff] %v323_v47  ;;  %v336_v52 = vmax.f32 %v801_v37, 0.0  ;;  %v337_v11 = vmax.f32 %v804_v41, 0.0  ;;  %v338_v30 = vmax.f32 %v807_v45, 0.0  ;;  %v339_v1 = vmax.f32 %v809_v49, 0.0 }
 0x1cc   : > { %356 = vst [vmem:[%s824_s14 + $0x40] sm:$0xff] %v324_v20  ;;  %357 = vst [vmem:[%s824_s14 + $0x48] sm:$0xff] %v325_v51  ;;  %v340_v32 = vmax.f32 %v811_v53, 0.0  ;;  %v341_v54 = vmax.f32 %v813_v57, 0.0  ;;  %v342_v19 = vmax.f32 %v815_v61, 0.0  ;;  %v343_v34 = vmax.f32 %v817_v63, 0.0 }
 0x1cd   : > { %358 = vst [vmem:[%s824_s14 + $0x50] sm:$0xff] %v326_v22  ;;  %359 = vst [vmem:[%s824_s14 + $0x58] sm:$0xff] %v327_v46  ;;  %v344_v6 = vmax.f32 %v826_v13, 0.0  ;;  %v345_v56 = vmax.f32 %v828_v17, 0.0  ;;  %v346_v36 = vmax.f32 %v830_v21, 0.0  ;;  %v347_v8 = vmax.f32 %v832_v23, 0.0 }
 0x1ce   : > { %360 = vst [vmem:[%s824_s14 + $0x60] sm:$0xff] %v328_v55  ;;  %361 = vst [vmem:[%s824_s14 + $0x68] sm:$0xff] %v329_v24 }
 0x1cf   : > { %362 = vst [vmem:[%s824_s14 + $0x70] sm:$0xff] %v330_v48  ;;  %363 = vst [vmem:[%s824_s14 + $0x78] sm:$0xff] %v331_v59 }
 0x1d0   : > { %364 = vst [vmem:[%s824_s14 + $0x80] sm:$0xff] %v332_v26  ;;  %365 = vst [vmem:[%s824_s14 + $0x88] sm:$0xff] %v333_v50 }
 0x1d1   : > { %366 = vst [vmem:[%s824_s14 + $0x90] sm:$0xff] %v334_v62  ;;  %367 = vst [vmem:[%s824_s14 + $0x98] sm:$0xff] %v335_v28 }
 0x1d2   : > { %368 = vst [vmem:[%s824_s14 + $0xa0] sm:$0xff] %v336_v52  ;;  %369 = vst [vmem:[%s824_s14 + $0xa8] sm:$0xff] %v337_v11 }
 0x1d3   : > { %370 = vst [vmem:[%s824_s14 + $0xb0] sm:$0xff] %v338_v30  ;;  %371 = vst [vmem:[%s824_s14 + $0xb8] sm:$0xff] %v339_v1 }
 0x1d4   : > { %372 = vst [vmem:[%s824_s14 + $0xc0] sm:$0xff] %v340_v32  ;;  %373 = vst [vmem:[%s824_s14 + $0xc8] sm:$0xff] %v341_v54 }
 0x1d5   : > { %374 = vst [vmem:[%s824_s14 + $0xd0] sm:$0xff] %v342_v19  ;;  %375 = vst [vmem:[%s824_s14 + $0xd8] sm:$0xff] %v343_v34 }
 0x1d6   : > { %376 = vst [vmem:[%s824_s14 + $0xe0] sm:$0xff] %v344_v6  ;;  %377 = vst [vmem:[%s824_s14 + $0xe8] sm:$0xff] %v345_v56 }
 0x1d7   : > { %378 = vst [vmem:[%s824_s14 + $0xf0] sm:$0xff] %v346_v36  ;;  %379 = vst [vmem:[%s824_s14 + $0xf8] sm:$0xff] %v347_v8 }
 0x1d8 PF: > { %s11_s6 = sadd.s32 1, %s464_s6  }
 0x1d9   : > { %p8_p4 = scmp.ge.s32.totalorder %s11_s6, 6  }
 0x1db   :  { %10 = sbr.rel (!%p8_p4) target bundleno = 1 (0x1), region = 54 }

</bundles_post_ra>
